<compile_context>
chip_gen: v5e
topology: v5e:2x2
jax: 0.10.0
libtpu: 0.0.40
codegen_flags: <defaults>
</compile_context>

<pallas_src>
import functools
import math

import numpy as np
import jax
import jax.numpy as jnp
from jax import lax
from jax.experimental import pallas as pl
from jax.experimental.pallas import tpu as pltpu


# ------------------------------- fused attention kernel --------------------------------
def _make_mha_kernel(num_heads, head_dim, scale, emit_probs):
    """Builds the fused MHA kernel.  When emit_probs=False there is no probs output."""
    hidden = num_heads * head_dim

    def kernel(x_ref, wqkv_ref, bqkv_ref, wo_ref, bo_ref, out_ref, *rest):
        probs_ref = rest[0] if emit_probs else None

        # Fused QKV projection: one (S, H) x (H, 3H) matmul -> lane-dense result.
        x = x_ref[0].astype(jnp.bfloat16)                                   # (S, H)
        qkv = jnp.dot(x, wqkv_ref[...], preferred_element_type=jnp.float32)
        qkv = qkv + bqkv_ref[...]                                           # (S, 3H) f32

        ctx_heads = []
        for h in range(num_heads):                                          # static unroll
            lo = h * head_dim
            # scale folded into q (exact at power-of-two head dims), applied in f32.
            q = (qkv[:, lo:lo + head_dim] * scale).astype(jnp.bfloat16)                 # (S, d)
            k = qkv[:, hidden + lo:hidden + lo + head_dim].astype(jnp.bfloat16)         # (S, d)
            v = qkv[:, 2 * hidden + lo:2 * hidden + lo + head_dim].astype(jnp.bfloat16) # (S, d)

            # scores = q @ k^T without an explicit in-kernel transpose.
            s = lax.dot_general(q, k, (((1,), (1,)), ((), ())),
                                preferred_element_type=jnp.float32)          # (S, S)
            s = s - jnp.max(s, axis=-1, keepdims=True)
            p = jnp.exp(s)
            p = p * pl.reciprocal(jnp.sum(p, axis=-1, keepdims=True), approx=True)

            if emit_probs:
                probs_ref[0, h] = p.astype(probs_ref.dtype)                  # vis weights
            ctx_heads.append(jnp.dot(p.astype(jnp.bfloat16), v,
                                     preferred_element_type=jnp.float32))    # (S, d)

        ctx = jnp.concatenate(ctx_heads, axis=-1).astype(jnp.bfloat16)       # (S, H)
        out = jnp.dot(ctx, wo_ref[...], preferred_element_type=jnp.float32) + bo_ref[...]
        # attn_dropout / proj_dropout: eval mode -> identity.
        out_ref[0] = out.astype(out_ref.dtype)

    return kernel


def fused_attention(x, w_qkv, b_qkv, w_o, b_o, *, num_heads, return_probs=True):
    """x: (B, S, H) f32.  w_qkv: (H, 3H).  Returns (out (B,S,H), probs (B,heads,S,S)|None)."""
    B, S, H = x.shape
    assert H % num_heads == 0
    head_dim = H // num_heads
    scale = 1.0 / math.sqrt(head_dim)

    kernel = _make_mha_kernel(num_heads, head_dim, scale, return_probs)

    out_sds = jax.ShapeDtypeStruct((B, S, H), jnp.float32)
    out_spec = pl.BlockSpec((1, S, H), lambda b: (b, 0, 0))
    if return_probs:
        out_shape = (out_sds, jax.ShapeDtypeStruct((B, num_heads, S, S), jnp.float32))
        out_specs = (out_spec, pl.BlockSpec((1, num_heads, S, S), lambda b: (b, 0, 0, 0)))
    else:
        out_shape = out_sds
        out_specs = out_spec

    result = pl.pallas_call(
        kernel,
        out_shape=out_shape,
        grid_spec=pltpu.PrefetchScalarGridSpec(
            num_scalar_prefetch=0,
            grid=(B,),
            in_specs=[
                pl.BlockSpec((1, S, H), lambda b: (b, 0, 0)),        # activations
                pl.BlockSpec((H, 3 * H), lambda b: (0, 0)),          # fused QKV weight
                pl.BlockSpec((1, 3 * H), lambda b: (0, 0)),          # fused QKV bias
                pl.BlockSpec((H, H), lambda b: (0, 0)),              # output proj weight
                pl.BlockSpec((1, H), lambda b: (0, 0)),              # output proj bias
            ],
            out_specs=out_specs,
        ),
        compiler_params=pltpu.CompilerParams(dimension_semantics=("parallel",)),
    )(x.astype(jnp.float32),
      w_qkv.astype(jnp.bfloat16), b_qkv.reshape(1, -1).astype(jnp.float32),
      w_o.astype(jnp.bfloat16), b_o.reshape(1, -1).astype(jnp.float32))

    if return_probs:
        out, probs = result
        return out, probs
    return result, None


def attention_forward(params, hidden_states, *, num_heads, vis=False):
    """Mirrors Attention.forward: returns (attention_output, weights-or-None)."""
    out, probs = fused_attention(hidden_states,
                                 params["w_qkv"], params["b_qkv"],
                                 params["w_o"], params["b_o"],
                                 num_heads=num_heads, return_probs=vis)
    return out, (probs if vis else None)


# ----------------------------------- params / reference --------------------------------
def init_attention_params(key, hidden, num_heads):
    del num_heads  # all_head_size == hidden_size in this config

    def linear(k, fan_in, fan_out):   # torch.nn.Linear default-style init
        kw, kb = jax.random.split(k)
        bound = 1.0 / np.sqrt(fan_in)
        w = jax.random.uniform(kw, (fan_in, fan_out), jnp.float32, -bound, bound)
        b = jax.random.uniform(kb, (fan_out,), jnp.float32, -bound, bound)
        return w, b

    ks = jax.random.split(key, 4)
    wq, bq = linear(ks[0], hidden, hidden)
    wk, bk = linear(ks[1], hidden, hidden)
    wv, bv = linear(ks[2], hidden, hidden)
    wo, bo = linear(ks[3], hidden, hidden)
    return {
        "w_qkv": jnp.concatenate([wq, wk, wv], axis=1),   # fused (H, 3H)
        "b_qkv": jnp.concatenate([bq, bk, bv], axis=0),   # fused (3H,)
        "w_o": wo,
        "b_o": bo,
    }


def attention_ref(params, x, *, num_heads):
    """Pure-JAX f32 reference replicating the PyTorch module (eval mode)."""
    B, S, H = x.shape
    hd = H // num_heads
    wq, wk, wv = jnp.split(params["w_qkv"], 3, axis=1)
    bq, bk, bv = jnp.split(params["b_qkv"], 3, axis=0)

    def heads(t):  # (B, S, H) -> (B, nh, S, hd)
        return t.reshape(B, S, num_heads, hd).transpose(0, 2, 1, 3)

    q, k, v = heads(x @ wq + bq), heads(x @ wk + bk), heads(x @ wv + bv)
    s = jnp.einsum("bhqd,bhkd->bhqk", q, k) / np.sqrt(hd)
    p = jax.nn.softmax(s, axis=-1)
    ctx = jnp.einsum("bhqk,bhkd->bhqd", p, v).transpose(0, 2, 1, 3).reshape(B, S, H)
    return ctx @ params["w_o"] + params["b_o"], p


# ----------------------------------------- main -----------------------------------------
if __name__ == "__main__":
    # Shapes implied by the DATransUNet config at a small test size:
    # hidden_size=64, num_heads=4, sequence = (32/8)^2 = 16 patches, batch=2.
    B, SEQ, HIDDEN, HEADS = 2, 16, 64, 4

    root = jax.random.PRNGKey(0)
    pkey, xkey = jax.random.split(root)
    params = init_attention_params(pkey, HIDDEN, HEADS)
    x = jax.random.normal(xkey, (B, SEQ, HIDDEN), jnp.float32)

    # vis=True path: output + attention probabilities.
    fwd_vis = jax.jit(functools.partial(attention_forward, num_heads=HEADS, vis=True))
    out, probs = fwd_vis(params, x)
    jax.block_until_ready((out, probs))

    assert out.shape == (B, SEQ, HIDDEN), out.shape
    assert probs.shape == (B, HEADS, SEQ, SEQ), probs.shape
    assert bool(jnp.all(jnp.isfinite(out))) and bool(jnp.all(jnp.isfinite(probs)))

    # Loose tolerance: kernel uses bf16 MXU operands with f32 accumulation.
    ref_out, ref_probs = attention_ref(params, x, num_heads=HEADS)
    rel_err = float(jnp.max(jnp.abs(out - ref_out))) / (float(jnp.max(jnp.abs(ref_out))) + 1e-6)
    prob_err = float(jnp.max(jnp.abs(probs - ref_probs)))
    assert rel_err < 0.08, ("output mismatch", rel_err)
    assert prob_err < 0.08, ("attention-prob mismatch", prob_err)

    # vis=False path: no probs output is materialized at all (matches the module's None).
    fwd = jax.jit(functools.partial(attention_forward, num_heads=HEADS, vis=False))
    out2, w2 = fwd(params, x)
    jax.block_until_ready(out2)
    assert w2 is None
    rel_err2 = float(jnp.max(jnp.abs(out2 - ref_out))) / (float(jnp.max(jnp.abs(ref_out))) + 1e-6)
    assert rel_err2 < 0.08, ("vis=False output mismatch", rel_err2)

    print("KERNEL_OK")
</pallas_src>

<mosaic_0001>
module attributes {stable_mosaic.version = 11 : i64} {
  func.func @kernel(%arg0: i32, %arg1: memref<1x16x64xf32, #tpu.memory_space<vmem>>, %arg2: memref<64x192xbf16, #tpu.memory_space<vmem>>, %arg3: memref<1x192xf32, #tpu.memory_space<vmem>>, %arg4: memref<64x64xbf16, #tpu.memory_space<vmem>>, %arg5: memref<1x64xf32, #tpu.memory_space<vmem>>, %arg6: memref<1x16x64xf32, #tpu.memory_space<vmem>>, %arg7: memref<1x4x16x16xf32, #tpu.memory_space<vmem>>) attributes {dimension_semantics = [#tpu.dimension_semantics<parallel>], iteration_bounds = array<i64: 2>, scalar_prefetch = 0 : i64, scratch_operands = 0 : i64, tpu.core_type = #tpu.core_type<tc>, window_params = [{transform_indices = @transform_0, window_bounds = array<i64: 1, 16, 64>}, {pipeline_mode = #tpu.pipeline_mode<synchronous>, transform_indices = @transform_1, window_bounds = array<i64: 64, 192>}, {pipeline_mode = #tpu.pipeline_mode<synchronous>, transform_indices = @transform_2, window_bounds = array<i64: 1, 192>}, {pipeline_mode = #tpu.pipeline_mode<synchronous>, transform_indices = @transform_3, window_bounds = array<i64: 64, 64>}, {pipeline_mode = #tpu.pipeline_mode<synchronous>, transform_indices = @transform_4, window_bounds = array<i64: 1, 64>}, {transform_indices = @transform_5, window_bounds = array<i64: 1, 16, 64>}, {transform_indices = @transform_6, window_bounds = array<i64: 1, 4, 16, 16>}]} {
    %c0 = arith.constant 0 : index
    %c0_0 = arith.constant 0 : index
    %c0_1 = arith.constant 0 : index
    %0 = vector.load %arg1[%c0, %c0_0, %c0_1] : memref<1x16x64xf32, #tpu.memory_space<vmem>>, vector<1x16x64xf32>
    %1 = vector.shape_cast %0 : vector<1x16x64xf32> to vector<16x64xf32>
    %2 = arith.truncf %1 : vector<16x64xf32> to vector<16x64xbf16>
    %c0_2 = arith.constant 0 : index
    %c0_3 = arith.constant 0 : index
    %3 = vector.load %arg2[%c0_2, %c0_3] : memref<64x192xbf16, #tpu.memory_space<vmem>>, vector<64x192xbf16>
    %cst = arith.constant dense<0.000000e+00> : vector<16x192xf32>
    %4 = tpu.matmul %2, %3, %cst {dimension_numbers = #tpu.dot_dimension_numbers<[1], [0], [0], [1], [0, 0, 1, 1], [], []>} : vector<16x64xbf16>, vector<64x192xbf16>, vector<16x192xf32> -> vector<16x192xf32>
    %c0_4 = arith.constant 0 : index
    %c0_5 = arith.constant 0 : index
    %5 = vector.load %arg3[%c0_4, %c0_5] : memref<1x192xf32, #tpu.memory_space<vmem>>, vector<1x192xf32>
    %6 = vector.broadcast %5 : vector<1x192xf32> to vector<16x192xf32>
    %7 = arith.addf %4, %6 : vector<16x192xf32>
    %8 = vector.extract_strided_slice %7 {offsets = [0, 0], sizes = [16, 16], strides = [1, 1]} : vector<16x192xf32> to vector<16x16xf32>
    %cst_6 = arith.constant 2.500000e-01 : f32
    %9 = vector.broadcast %cst_6 : f32 to vector<16x16xf32>
    %10 = arith.mulf %8, %9 : vector<16x16xf32>
    %11 = arith.truncf %10 : vector<16x16xf32> to vector<16x16xbf16>
    %12 = vector.extract_strided_slice %7 {offsets = [0, 64], sizes = [16, 16], strides = [1, 1]} : vector<16x192xf32> to vector<16x16xf32>
    %13 = arith.truncf %12 : vector<16x16xf32> to vector<16x16xbf16>
    %14 = vector.extract_strided_slice %7 {offsets = [0, 128], sizes = [16, 16], strides = [1, 1]} : vector<16x192xf32> to vector<16x16xf32>
    %15 = arith.truncf %14 : vector<16x16xf32> to vector<16x16xbf16>
    %cst_7 = arith.constant dense<0.000000e+00> : vector<16x16xf32>
    %16 = tpu.matmul %11, %13, %cst_7 {dimension_numbers = #tpu.dot_dimension_numbers<[1], [1], [0], [0], [0, 0, 1, 0], [], []>} : vector<16x16xbf16>, vector<16x16xbf16>, vector<16x16xf32> -> vector<16x16xf32>
    %cst_8 = arith.constant dense<0xFF800000> : vector<16xf32>
    %17 = vector.multi_reduction <maximumf>, %16, %cst_8 [1] : vector<16x16xf32> to vector<16xf32>
    %18 = vector.shape_cast %17 : vector<16xf32> to vector<16x1xf32>
    %19 = vector.broadcast %18 : vector<16x1xf32> to vector<16x16xf32>
    %20 = arith.subf %16, %19 : vector<16x16xf32>
    %21 = math.exp %20 : vector<16x16xf32>
    %cst_9 = arith.constant dense<0.000000e+00> : vector<16xf32>
    %22 = vector.multi_reduction <add>, %21, %cst_9 [1] : vector<16x16xf32> to vector<16xf32>
    %23 = vector.shape_cast %22 : vector<16xf32> to vector<16x1xf32>
    %24 = tpu.reciprocal %23 {approx = true} : vector<16x1xf32> -> vector<16x1xf32>
    %25 = vector.broadcast %24 : vector<16x1xf32> to vector<16x16xf32>
    %26 = arith.mulf %21, %25 : vector<16x16xf32>
    %c0_10 = arith.constant 0 : index
    %c0_11 = arith.constant 0 : index
    %c0_12 = arith.constant 0 : index
    %c0_13 = arith.constant 0 : index
    %27 = vector.load %arg7[%c0_10, %c0_11, %c0_12, %c0_13] : memref<1x4x16x16xf32, #tpu.memory_space<vmem>>, vector<1x1x16x16xf32>
    %28 = vector.shape_cast %27 : vector<1x1x16x16xf32> to vector<16x16xf32>
    %29 = vector.shape_cast %26 : vector<16x16xf32> to vector<1x1x16x16xf32>
    tpu.vector_store %arg7[%c0_10, %c0_11, %c0_12, %c0_13], %29 {strides = array<i32>} : memref<1x4x16x16xf32, #tpu.memory_space<vmem>>, vector<1x1x16x16xf32>,
    %30 = arith.truncf %26 : vector<16x16xf32> to vector<16x16xbf16>
    %cst_14 = arith.constant dense<0.000000e+00> : vector<16x16xf32>
    %31 = tpu.matmul %30, %15, %cst_14 {dimension_numbers = #tpu.dot_dimension_numbers<[1], [0], [0], [1], [0, 0, 1, 1], [], []>} : vector<16x16xbf16>, vector<16x16xbf16>, vector<16x16xf32> -> vector<16x16xf32>
    %32 = vector.extract_strided_slice %7 {offsets = [0, 16], sizes = [16, 16], strides = [1, 1]} : vector<16x192xf32> to vector<16x16xf32>
    %cst_15 = arith.constant 2.500000e-01 : f32
    %33 = vector.broadcast %cst_15 : f32 to vector<16x16xf32>
    %34 = arith.mulf %32, %33 : vector<16x16xf32>
    %35 = arith.truncf %34 : vector<16x16xf32> to vector<16x16xbf16>
    %36 = vector.extract_strided_slice %7 {offsets = [0, 80], sizes = [16, 16], strides = [1, 1]} : vector<16x192xf32> to vector<16x16xf32>
    %37 = arith.truncf %36 : vector<16x16xf32> to vector<16x16xbf16>
    %38 = vector.extract_strided_slice %7 {offsets = [0, 144], sizes = [16, 16], strides = [1, 1]} : vector<16x192xf32> to vector<16x16xf32>
    %39 = arith.truncf %38 : vector<16x16xf32> to vector<16x16xbf16>
    %cst_16 = arith.constant dense<0.000000e+00> : vector<16x16xf32>
    %40 = tpu.matmul %35, %37, %cst_16 {dimension_numbers = #tpu.dot_dimension_numbers<[1], [1], [0], [0], [0, 0, 1, 0], [], []>} : vector<16x16xbf16>, vector<16x16xbf16>, vector<16x16xf32> -> vector<16x16xf32>
    %cst_17 = arith.constant dense<0xFF800000> : vector<16xf32>
    %41 = vector.multi_reduction <maximumf>, %40, %cst_17 [1] : vector<16x16xf32> to vector<16xf32>
    %42 = vector.shape_cast %41 : vector<16xf32> to vector<16x1xf32>
    %43 = vector.broadcast %42 : vector<16x1xf32> to vector<16x16xf32>
    %44 = arith.subf %40, %43 : vector<16x16xf32>
    %45 = math.exp %44 : vector<16x16xf32>
    %cst_18 = arith.constant dense<0.000000e+00> : vector<16xf32>
    %46 = vector.multi_reduction <add>, %45, %cst_18 [1] : vector<16x16xf32> to vector<16xf32>
    %47 = vector.shape_cast %46 : vector<16xf32> to vector<16x1xf32>
    %48 = tpu.reciprocal %47 {approx = true} : vector<16x1xf32> -> vector<16x1xf32>
    %49 = vector.broadcast %48 : vector<16x1xf32> to vector<16x16xf32>
    %50 = arith.mulf %45, %49 : vector<16x16xf32>
    %c0_19 = arith.constant 0 : index
    %c1 = arith.constant 1 : index
    %c0_20 = arith.constant 0 : index
    %c0_21 = arith.constant 0 : index
    %51 = vector.load %arg7[%c0_19, %c1, %c0_20, %c0_21] : memref<1x4x16x16xf32, #tpu.memory_space<vmem>>, vector<1x1x16x16xf32>
    %52 = vector.shape_cast %51 : vector<1x1x16x16xf32> to vector<16x16xf32>
    %53 = vector.shape_cast %50 : vector<16x16xf32> to vector<1x1x16x16xf32>
    tpu.vector_store %arg7[%c0_19, %c1, %c0_20, %c0_21], %53 {strides = array<i32>} : memref<1x4x16x16xf32, #tpu.memory_space<vmem>>, vector<1x1x16x16xf32>,
    %54 = arith.truncf %50 : vector<16x16xf32> to vector<16x16xbf16>
    %cst_22 = arith.constant dense<0.000000e+00> : vector<16x16xf32>
    %55 = tpu.matmul %54, %39, %cst_22 {dimension_numbers = #tpu.dot_dimension_numbers<[1], [0], [0], [1], [0, 0, 1, 1], [], []>} : vector<16x16xbf16>, vector<16x16xbf16>, vector<16x16xf32> -> vector<16x16xf32>
    %56 = vector.extract_strided_slice %7 {offsets = [0, 32], sizes = [16, 16], strides = [1, 1]} : vector<16x192xf32> to vector<16x16xf32>
    %cst_23 = arith.constant 2.500000e-01 : f32
    %57 = vector.broadcast %cst_23 : f32 to vector<16x16xf32>
    %58 = arith.mulf %56, %57 : vector<16x16xf32>
    %59 = arith.truncf %58 : vector<16x16xf32> to vector<16x16xbf16>
    %60 = vector.extract_strided_slice %7 {offsets = [0, 96], sizes = [16, 16], strides = [1, 1]} : vector<16x192xf32> to vector<16x16xf32>
    %61 = arith.truncf %60 : vector<16x16xf32> to vector<16x16xbf16>
    %62 = vector.extract_strided_slice %7 {offsets = [0, 160], sizes = [16, 16], strides = [1, 1]} : vector<16x192xf32> to vector<16x16xf32>
    %63 = arith.truncf %62 : vector<16x16xf32> to vector<16x16xbf16>
    %cst_24 = arith.constant dense<0.000000e+00> : vector<16x16xf32>
    %64 = tpu.matmul %59, %61, %cst_24 {dimension_numbers = #tpu.dot_dimension_numbers<[1], [1], [0], [0], [0, 0, 1, 0], [], []>} : vector<16x16xbf16>, vector<16x16xbf16>, vector<16x16xf32> -> vector<16x16xf32>
    %cst_25 = arith.constant dense<0xFF800000> : vector<16xf32>
    %65 = vector.multi_reduction <maximumf>, %64, %cst_25 [1] : vector<16x16xf32> to vector<16xf32>
    %66 = vector.shape_cast %65 : vector<16xf32> to vector<16x1xf32>
    %67 = vector.broadcast %66 : vector<16x1xf32> to vector<16x16xf32>
    %68 = arith.subf %64, %67 : vector<16x16xf32>
    %69 = math.exp %68 : vector<16x16xf32>
    %cst_26 = arith.constant dense<0.000000e+00> : vector<16xf32>
    %70 = vector.multi_reduction <add>, %69, %cst_26 [1] : vector<16x16xf32> to vector<16xf32>
    %71 = vector.shape_cast %70 : vector<16xf32> to vector<16x1xf32>
    %72 = tpu.reciprocal %71 {approx = true} : vector<16x1xf32> -> vector<16x1xf32>
    %73 = vector.broadcast %72 : vector<16x1xf32> to vector<16x16xf32>
    %74 = arith.mulf %69, %73 : vector<16x16xf32>
    %c0_27 = arith.constant 0 : index
    %c2 = arith.constant 2 : index
    %c0_28 = arith.constant 0 : index
    %c0_29 = arith.constant 0 : index
    %75 = vector.load %arg7[%c0_27, %c2, %c0_28, %c0_29] : memref<1x4x16x16xf32, #tpu.memory_space<vmem>>, vector<1x1x16x16xf32>
    %76 = vector.shape_cast %75 : vector<1x1x16x16xf32> to vector<16x16xf32>
    %77 = vector.shape_cast %74 : vector<16x16xf32> to vector<1x1x16x16xf32>
    tpu.vector_store %arg7[%c0_27, %c2, %c0_28, %c0_29], %77 {strides = array<i32>} : memref<1x4x16x16xf32, #tpu.memory_space<vmem>>, vector<1x1x16x16xf32>,
    %78 = arith.truncf %74 : vector<16x16xf32> to vector<16x16xbf16>
    %cst_30 = arith.constant dense<0.000000e+00> : vector<16x16xf32>
    %79 = tpu.matmul %78, %63, %cst_30 {dimension_numbers = #tpu.dot_dimension_numbers<[1], [0], [0], [1], [0, 0, 1, 1], [], []>} : vector<16x16xbf16>, vector<16x16xbf16>, vector<16x16xf32> -> vector<16x16xf32>
    %80 = vector.extract_strided_slice %7 {offsets = [0, 48], sizes = [16, 16], strides = [1, 1]} : vector<16x192xf32> to vector<16x16xf32>
    %cst_31 = arith.constant 2.500000e-01 : f32
    %81 = vector.broadcast %cst_31 : f32 to vector<16x16xf32>
    %82 = arith.mulf %80, %81 : vector<16x16xf32>
    %83 = arith.truncf %82 : vector<16x16xf32> to vector<16x16xbf16>
    %84 = vector.extract_strided_slice %7 {offsets = [0, 112], sizes = [16, 16], strides = [1, 1]} : vector<16x192xf32> to vector<16x16xf32>
    %85 = arith.truncf %84 : vector<16x16xf32> to vector<16x16xbf16>
    %86 = vector.extract_strided_slice %7 {offsets = [0, 176], sizes = [16, 16], strides = [1, 1]} : vector<16x192xf32> to vector<16x16xf32>
    %87 = arith.truncf %86 : vector<16x16xf32> to vector<16x16xbf16>
    %cst_32 = arith.constant dense<0.000000e+00> : vector<16x16xf32>
    %88 = tpu.matmul %83, %85, %cst_32 {dimension_numbers = #tpu.dot_dimension_numbers<[1], [1], [0], [0], [0, 0, 1, 0], [], []>} : vector<16x16xbf16>, vector<16x16xbf16>, vector<16x16xf32> -> vector<16x16xf32>
    %cst_33 = arith.constant dense<0xFF800000> : vector<16xf32>
    %89 = vector.multi_reduction <maximumf>, %88, %cst_33 [1] : vector<16x16xf32> to vector<16xf32>
    %90 = vector.shape_cast %89 : vector<16xf32> to vector<16x1xf32>
    %91 = vector.broadcast %90 : vector<16x1xf32> to vector<16x16xf32>
    %92 = arith.subf %88, %91 : vector<16x16xf32>
    %93 = math.exp %92 : vector<16x16xf32>
    %cst_34 = arith.constant dense<0.000000e+00> : vector<16xf32>
    %94 = vector.multi_reduction <add>, %93, %cst_34 [1] : vector<16x16xf32> to vector<16xf32>
    %95 = vector.shape_cast %94 : vector<16xf32> to vector<16x1xf32>
    %96 = tpu.reciprocal %95 {approx = true} : vector<16x1xf32> -> vector<16x1xf32>
    %97 = vector.broadcast %96 : vector<16x1xf32> to vector<16x16xf32>
    %98 = arith.mulf %93, %97 : vector<16x16xf32>
    %c0_35 = arith.constant 0 : index
    %c3 = arith.constant 3 : index
    %c0_36 = arith.constant 0 : index
    %c0_37 = arith.constant 0 : index
    %99 = vector.load %arg7[%c0_35, %c3, %c0_36, %c0_37] : memref<1x4x16x16xf32, #tpu.memory_space<vmem>>, vector<1x1x16x16xf32>
    %100 = vector.shape_cast %99 : vector<1x1x16x16xf32> to vector<16x16xf32>
    %101 = vector.shape_cast %98 : vector<16x16xf32> to vector<1x1x16x16xf32>
    tpu.vector_store %arg7[%c0_35, %c3, %c0_36, %c0_37], %101 {strides = array<i32>} : memref<1x4x16x16xf32, #tpu.memory_space<vmem>>, vector<1x1x16x16xf32>,
    %102 = arith.truncf %98 : vector<16x16xf32> to vector<16x16xbf16>
    %cst_38 = arith.constant dense<0.000000e+00> : vector<16x16xf32>
    %103 = tpu.matmul %102, %87, %cst_38 {dimension_numbers = #tpu.dot_dimension_numbers<[1], [0], [0], [1], [0, 0, 1, 1], [], []>} : vector<16x16xbf16>, vector<16x16xbf16>, vector<16x16xf32> -> vector<16x16xf32>
    %104 = tpu.concatenate %31, %55, %79, %103 in 1 : vector<16x16xf32>, vector<16x16xf32>, vector<16x16xf32>, vector<16x16xf32> -> vector<16x64xf32>
    %105 = arith.truncf %104 : vector<16x64xf32> to vector<16x64xbf16>
    %c0_39 = arith.constant 0 : index
    %c0_40 = arith.constant 0 : index
    %106 = vector.load %arg4[%c0_39, %c0_40] : memref<64x64xbf16, #tpu.memory_space<vmem>>, vector<64x64xbf16>
    %cst_41 = arith.constant dense<0.000000e+00> : vector<16x64xf32>
    %107 = tpu.matmul %105, %106, %cst_41 {dimension_numbers = #tpu.dot_dimension_numbers<[1], [0], [0], [1], [0, 0, 1, 1], [], []>} : vector<16x64xbf16>, vector<64x64xbf16>, vector<16x64xf32> -> vector<16x64xf32>
    %c0_42 = arith.constant 0 : index
    %c0_43 = arith.constant 0 : index
    %108 = vector.load %arg5[%c0_42, %c0_43] : memref<1x64xf32, #tpu.memory_space<vmem>>, vector<1x64xf32>
    %109 = vector.broadcast %108 : vector<1x64xf32> to vector<16x64xf32>
    %110 = arith.addf %107, %109 : vector<16x64xf32>
    %c0_44 = arith.constant 0 : index
    %c0_45 = arith.constant 0 : index
    %c0_46 = arith.constant 0 : index
    %111 = vector.load %arg6[%c0_44, %c0_45, %c0_46] : memref<1x16x64xf32, #tpu.memory_space<vmem>>, vector<1x16x64xf32>
    %112 = vector.shape_cast %111 : vector<1x16x64xf32> to vector<16x64xf32>
    %113 = vector.shape_cast %110 : vector<16x64xf32> to vector<1x16x64xf32>
    tpu.vector_store %arg6[%c0_44, %c0_45, %c0_46], %113 {strides = array<i32>} : memref<1x16x64xf32, #tpu.memory_space<vmem>>, vector<1x16x64xf32>,
    return
  }
  func.func @transform_0(%arg0: i32) -> (i32, i32, i32) {
    %c0_i32 = arith.constant 0 : i32
    %c0_i32_0 = arith.constant 0 : i32
    %c0_i32_1 = arith.constant 0 : i32
    return %arg0, %c0_i32, %c0_i32_0 : i32, i32, i32
  }
  func.func @transform_1(%arg0: i32) -> (i32, i32) {
    %c0_i32 = arith.constant 0 : i32
    %c0_i32_0 = arith.constant 0 : i32
    %c0_i32_1 = arith.constant 0 : i32
    return %c0_i32, %c0_i32_0 : i32, i32
  }
  func.func @transform_2(%arg0: i32) -> (i32, i32) {
    %c0_i32 = arith.constant 0 : i32
    %c0_i32_0 = arith.constant 0 : i32
    %c0_i32_1 = arith.constant 0 : i32
    return %c0_i32, %c0_i32_0 : i32, i32
  }
  func.func @transform_3(%arg0: i32) -> (i32, i32) {
    %c0_i32 = arith.constant 0 : i32
    %c0_i32_0 = arith.constant 0 : i32
    %c0_i32_1 = arith.constant 0 : i32
    return %c0_i32, %c0_i32_0 : i32, i32
  }
  func.func @transform_4(%arg0: i32) -> (i32, i32) {
    %c0_i32 = arith.constant 0 : i32
    %c0_i32_0 = arith.constant 0 : i32
    %c0_i32_1 = arith.constant 0 : i32
    return %c0_i32, %c0_i32_0 : i32, i32
  }
  func.func @transform_5(%arg0: i32) -> (i32, i32, i32) {
    %c0_i32 = arith.constant 0 : i32
    %c0_i32_0 = arith.constant 0 : i32
    %c0_i32_1 = arith.constant 0 : i32
    return %arg0, %c0_i32, %c0_i32_0 : i32, i32, i32
  }
  func.func @transform_6(%arg0: i32) -> (i32, i32, i32, i32) {
    %c0_i32 = arith.constant 0 : i32
    %c0_i32_0 = arith.constant 0 : i32
    %c0_i32_1 = arith.constant 0 : i32
    %c0_i32_2 = arith.constant 0 : i32
    return %arg0, %c0_i32, %c0_i32_0, %c0_i32_1 : i32, i32, i32, i32
  }
}

</mosaic_0001>

<bundles_post_ra>
// kernel: attention_forward.1
= control target key start
LH: loop header
LB: loop body
LE: loop exit
PB: predicated region body
PF: predicated region fallthrough
CT: control target
= control target key end

     0   :  { %s1447_s0 = inlined_call_operand.vmem [shape: f32[2,16,64], index: 0, kind: input, shape index: {}]   ;;  %s1448_s1 = inlined_call_operand.vmem [shape: bf16[64,192], index: 1, kind: input, shape index: {}]   ;;  %s1449_s2 = inlined_call_operand.vmem [shape: f32[1,192], index: 2, kind: input, shape index: {}]   ;;  %s1450_s3 = inlined_call_operand.vmem [shape: bf16[64,64], index: 3, kind: input, shape index: {}]   ;;  %s1451_s4 = inlined_call_operand.vmem [shape: f32[1,64], index: 4, kind: input, shape index: {}]   ;;  %s1452_s5 = inlined_call_operand.hbm [shape: f32[2,16,64], index: 5, kind: output, shape index: {0}]   ;;  %s1453_s6 = inlined_call_operand.hbm [shape: f32[2,4,16,16], index: 6, kind: output, shape index: {1}]  }
   0x1   :  { %1454 = sst [smem:[#allocation8_spill]] %s1447_s0 }
   0x2   :  { %12 = vsyncpa [#allocation3], 0 }
   0x3   :  { %14 = vsyncpa [#allocation3 + $0x1], 0 }
   0x4   :  { %15 = vsyncpa [#allocation5], 0 }
   0x5   :  { %17 = vsyncpa [#allocation5 + $0x1], 0  ;;  %s1192_s21 = smov 0   ;;  %s1194_s22 = smov 0  }
   0x6   :  { %s1196_s23 = smov 0   ;;  %s1198_s24 = smov 0  }
   0x7 LB: > { %s1213_s25 = sadd.s32 4294967295, %s1146_s24   ;;  %s855_s26 = sadd.s32 4294967294, %s1146_s24   ;;  %s1146_s24 = sphi %s1198_s24, %s1461_s24   ;;  %s1142_s23 = sphi %s1196_s23, %s1460_s23   ;;  %s1138_s22 = sphi %s1194_s22, %s1459_s22   ;;  %s1134_s21 = sphi %s1192_s21, %s1458_s21  }
   0x8   : > { %s1217_s27 = sadd.s32 1, %s1146_s24   ;;  %s140_s28 = sadd.s32 1, %s1142_s23 }
   0x9   : > { %s137_s29 = ssub.s32 %s1146_s24, %s1217_s27  ;;  %p150_p0 = scmp.ne.s32.totalorder %s1142_s23, %s1138_s22 }
   0xa   : > { %p138_p1 = scmp.eq.s32.totalorder %s137_s29, 0  ;;  %p151_p2 = scmp.eq.s32.totalorder %s1213_s25, 1 }
   0xb   : > { %p156_p3 = scmp.ne.s32.totalorder %s1138_s22, %s1134_s21  ;;  %p157_p4 = scmp.eq.s32.totalorder %s855_s26, 1 }
   0xc   : > { %s1228_s30 = scalar_select %p138_p1, %s1142_s23, %s140_s28  }
   0xd   : > { %p1230_p5 = por %p151_p2, %p150_p0  ;;  %p1234_p6 = por %p157_p4, %p156_p3 }
   0xe   : > { %p858_p7 = scmp.ge.s32.totalorder %s1146_s24, 1  ;;  %p221_p8 = scmp.lt.s32.totalorder %s1146_s24, 3 }
  0x10   : > { %p222_p9 = pnand %p858_p7, %p221_p8 }
  0x11   : > { %p256_p10 = scmp.lt.s32.totalorder (!%p222_p9), %s1213_s25, 1  ;;  %s1457_s0 = sld [smem:[#allocation8_spill]] (!%p222_p9) }
  0x12   : > { %225 = sbr.rel (%p222_p9) target bundleno = 1684 (0x694), region = 40  ;;  %s1148_s18 = smov (!%p222_p9), 48  }
  0x13   : > { %s1149_s19 = smov (!%p222_p9), 64   ;;  %s1150_s20 = smov (!%p222_p9), 112  }
  0x14   : > { %s1151_s26 = smov (!%p222_p9), 16   ;;  %s1152_s28 = smov (!%p222_p9), 32  }
  0x15   : > { %s1153_s29 = smov (!%p222_p9), 80   ;;  %s1154_s9 = smov (!%p222_p9), 96  }
  0x16   : > { %s1315_s10 = sand.u32 (!%p222_p9), 1, %s1138_s22  }
  0x17   : > { %v889_v0 = vld [vmem:[%s1448_s1 + $0x30] sm:$0xf]  ;;  %v944_v1 = vld [vmem:[%s1448_s1 + $0x34] sm:$0xf0]  ;;  %v881_v2 = vld [vmem:[%s1448_s1 + $0x20] sm:$0xf] }
  0x18   : > { %v890_v3 = vor.u32 %v944_v1, %v889_v0  ;;  %v942_v4 = vld [vmem:[%s1448_s1 + $0x24] sm:$0xf0]  ;;  %v873_v5 = vld [vmem:[%s1448_s1 + $0x10] sm:$0xf]  ;;  %v943_v7 = vld [vmem:[%s1448_s1 + $0x34] sm:$0xf] }
  0x19   : > { %v882_v6 = vor.u32 %v942_v4, %v881_v2  ;;  %v891_v8 = vld [vmem:[%s1448_s1 + $0x38] sm:$0xf0]  ;;  %v941_v9 = vld [vmem:[%s1448_s1 + $0x24] sm:$0xf]  ;;  %v940_v10 = vld [vmem:[%s1448_s1 + $0x14] sm:$0xf0] }
  0x1a   : > { %327 = vmatpush.bf16.msra.mxu0 %v890_v3  ;;  %s257_s12 = scalar_select %p256_p10, %s1213_s25, 1  ;;  %v894_v11 = vor.u32 %v943_v7, %v891_v8  ;;  %v883_v12 = vld [vmem:[%s1448_s1 + $0x28] sm:$0xf0]  ;;  %v874_v14 = vor.u32 %v940_v10, %v873_v5  ;;  %v939_v15 = vld [vmem:[%s1448_s1 + $0x14] sm:$0xf]  ;;  %vm319_vm0 = vcmask 523264  }
  0x1b   : > { %v886_v13 = vor.u32 %v941_v9, %v883_v12  ;;  %v875_v16 = vld [vmem:[%s1448_s1 + $0x18] sm:$0xf0]  ;;  %v865_v17 = vld [vmem:[%s1448_s1] sm:$0xf]  ;;  %v938_v18 = vld [vmem:[%s1448_s1 + $0x4] sm:$0xf0] }
  0x1c   : > { %s936_s15 = sshll.u32 %s257_s12, 4  ;;  %341 = vmatpush.bf16.msra.mxu1 %v894_v11  ;;  %v878_v19 = vor.u32 %v939_v15, %v875_v16  ;;  %v937_v20 = vld [vmem:[%s1448_s1 + $0x4] sm:$0xf]  ;;  %v866_v21 = vor.u32 %v938_v18, %v865_v17  ;;  %v867_v24 = vld [vmem:[%s1448_s1 + $0x8] sm:$0xf0]  ;;  %vm359_vm1 = vcmask 130048  }
  0x1d   : > { %s260_s11 = scalar_lea.vmem %s1457_s0, %s936_s15  ;;  %v870_v26 = vor.u32 %v937_v20, %v867_v24  ;;  %v273_v27 = vld [vmem:[%s1449_s2] sm:$0x3]  ;;  %vm660_vm2 = vcmask 261120   ;;  %vm663_vm3 = vcmask 392192   ;;  %s728_s14 = scalar_lea.sflag [#allocation5], %s1315_s10 }
  0x1e   : > { %328 = vmatpush.bf16.msra.mxu0 %v882_v6  ;;  %v262_v22 = vld [vmem:[%s260_s11] sm:$0xff]  ;;  %v263_v23 = vld [vmem:[%s260_s11 + $0x8] sm:$0xff]  ;;  %v275_v29 = vperm.slane %v273_v27, 0  ;;  %v276_v31 = vperm.slane %v273_v27, 1  ;;  %s860_s11 = sshll.u32 %s1315_s10, 6 }
  0x1f   : > { %v264_v25 = vpack.c.bf16 %v263_v23, %v262_v22  ;;  %s1318_s12 = scalar_lea.vmem [#allocation4], %s860_s11 }
  0x20   : > { %342 = vmatpush.bf16.msra.mxu1 %v886_v13  ;;  %s757_s11 = sshll.u32 %s1318_s12, 4  ;;  %s758_s11 = int_to_ptr.vmem [resolvable:$true] %s757_s11 }
  0x22   : > { %329 = vmatpush.bf16.msra.mxu0 %v874_v14 }
  0x24   : > { %343 = vmatpush.bf16.msra.mxu1 %v878_v19 }
  0x26   : > { %330 = vmatpush.bf16.msra.mxu0 %v866_v21 }
  0x28   : > { %344 = vmatpush.bf16.msra.mxu1 %v870_v26 }
  0x29   : > { %895 = vmatmul.msk.bf16.vlgmr.msra.gmra.mxu0 %vm319_vm0, %v264_v25 }
  0x2b   : > { %896 = vmatmul.msk.bf16.vlgmr.msra.gmra.mxu1 %vm319_vm0, %v264_v25 }
  0xa6   : > { %v332_v28 = vpop.f32.mrf.mxu0 }
  0xa7   : > { %v333_v32 = vadd.f32 %v332_v28, %v275_v29 }
  0xa8   : > { %v346_v30 = vpop.f32.mrf.mxu1 }
  0xa9   : > { %v347_v35 = vadd.f32 %v346_v30, %v276_v31  ;;  %v351_v36 = vmul.f32 0.25, %v333_v32 }
  0xae   : > { %v334_v33 = vpop.f32.mrf.mxu0 }
  0xaf   : > { %v335_v34 = vadd.f32 %v334_v33, %v275_v29 }
  0xb0   : > { %v348_v39 = vpop.f32.mrf.mxu1 }
  0xb1   : > { %v352_v37 = vmul.f32 0.25, %v335_v34  ;;  %v354_v38 = vpack.c.bf16 %v335_v34, %v333_v32  ;;  %v349_v40 = vadd.f32 %v348_v39, %v276_v31 }
  0xb3   : > { %v353_v41 = vpack.c.bf16 %v352_v37, %v351_v36  ;;  %425 = vrot.lane.b32.xlu2 %v354_v38, %s1148_s18  ;;  %357 = vrot.lane.b32.xlu0 %v354_v38, %s1149_s19  ;;  %v1299_v42 = vpack.c.bf16 %v349_v40, %v347_v35 }
  0xb5   : > { %415 = vmatpush.bf16.msra.mxu3 %v1299_v42 }
 0x10d   : > { %v426_v43 = vpop.permute.xlu2 %425 }
 0x10e   : > { %v431_v44 = vsel %vm359_vm1, %v426_v43, 0 }
 0x10f   : > { %440 = vmatpush.bf16.xpose.msrb.mxu3 %v431_v44 }
 0x125   : > { %v358_v45 = vpop.permute.xlu0 %357 }
 0x126   : > { %v364_v46 = vsel %vm359_vm1, %v358_v45, 0 }
 0x127   : > { %373 = vmatpush.bf16.xpose.msra.mxu2 %v364_v46 }
 0x12e   : > { %897 = vmatmul.msk.bf16.vlgmr.msra.gmra.mxu2 %vm359_vm1, %v353_v41 }
 0x1b1   : > { %v375_v47 = vpop.f32.mrf.mxu2 }
 0x1b2   : > { %v380_v48 = vsel %vm359_vm1, %v375_v47, -inf }
 0x1b3   : > { %381 = vmax.xlane.f32.xlu0 %v380_v48 }
 0x1b9   : > { %v377_v49 = vpop.f32.mrf.mxu2 }
 0x1ba   : > { %v383_v50 = vsel %vm359_vm1, %v377_v49, -inf }
 0x1bb   : > { %384 = vmax.xlane.f32.xlu1 %v383_v50 }
 0x226   : > { %v382_v51 = vpop.xlane.xlu0 %381 }
 0x227   : > { %v386_v52 = vsub.f32 %v375_v47, %v382_v51 }
 0x229   : > { %v388_v53 = vmul.f32 1.442695, %v386_v52 }
 0x22b   : > { %1020 = vpow2.f32 %v388_v53 }
 0x22e   : > { %v385_v54 = vpop.xlane.xlu1 %384 }
 0x22f   : > { %v387_v55 = vsub.f32 %v377_v49, %v385_v54 }
 0x231   : > { %v1021_v56 = vpop.eup %1020  ;;  %v390_v57 = vmul.f32 1.442695, %v387_v55 }
 0x232   : > { %v392_v58 = vsel %vm359_vm1, %v1021_v56, 0.0 }
 0x233   : > { %1022 = vpow2.f32 %v390_v57  ;;  %393 = vadd.xlane.f32.xlu1 %v392_v58 }
 0x239   : > { %v1023_v59 = vpop.eup %1022 }
 0x23a   : > { %v395_v60 = vsel %vm359_vm1, %v1023_v59, 0.0 }
 0x23b   : > { %396 = vadd.xlane.f32.xlu2 %v395_v60 }
 0x24c   : > { %423 = vrot.lane.b32.xlu1 %v353_v41, %s1150_s20 }
 0x253   : > { %566 = vrot.lane.b32.xlu2 %v354_v38, %s1151_s26 }
 0x254   : > { %496 = vrot.lane.b32.xlu1 %v354_v38, %s1152_s28 }
 0x25b   : > { %564 = vrot.lane.b32.xlu2 %v353_v41, %s1153_s29 }
 0x263   : > { %494 = vrot.lane.b32.xlu2 %v353_v41, %s1154_s9 }
 0x2a6   : > { %v394_v61 = vpop.xlane.xlu1 %393 }
 0x2a7   : > { %1024 = vrcp.f32 %v394_v61 }
 0x2ad   : > { %v1025_v62 = vpop.eup %1024 }
 0x2ae   : > { %v397_v63 = vpop.xlane.xlu2 %396  ;;  %v400_v0 = vmul.f32 %v1025_v62, %v1021_v56 }
 0x2af   : > { %1026 = vrcp.f32 %v397_v63 }
 0x2b0   : > { %402 = vst.msk [vmem:[%s1318_s12] sm:$0xff] %vm359_vm1, %v400_v0 }
 0x2b5   : > { %v1027_v1 = vpop.eup %1026 }
 0x2b6   : > { %v401_v2 = vmul.f32 %v1027_v1, %v1023_v59  ;;  %v567_v3 = vpop.permute.xlu2 %566 }
 0x2b7   : > { %v572_v5 = vsel %vm359_vm1, %v567_v3, 0 }
 0x2b8   : > { %403 = vst.msk [vmem:[%s1318_s12 + $0x8] sm:$0xff] %vm359_vm1, %v401_v2  ;;  %v404_v4 = vpack.c.bf16 %v401_v2, %v400_v0 }
 0x2ba   : > { %898 = vmatmul.msk.bf16.vlgmr.msra.gmra.mxu3 %vm359_vm1, %v404_v4 }
 0x2bb   : > { %581 = vmatpush.bf16.xpose.msra.mxu3 %v572_v5 }
 0x2be   : > { %v424_v6 = vpop.permute.xlu1 %423  ;;  %v565_v7 = vpop.permute.xlu2 %564 }
 0x2c6   : > { %v497_v8 = vpop.permute.xlu1 %496  ;;  %v495_v10 = vpop.permute.xlu2 %494 }
 0x2c7   : > { %v502_v9 = vsel %vm359_vm1, %v497_v8, 0 }
 0x2c8   : > { %511 = vmatpush.bf16.xpose.msrb.mxu0 %v502_v9 }
 0x2ca   : > { %899 = vmatmul.msk.bf16.vlgmr.msrb.gmra.mxu3 %vm359_vm1, %v424_v6 }
 0x2cf   : > { %903 = vmatmul.msk.bf16.vlgmr.msrb.gmra.mxu0 %vm359_vm1, %v495_v10 }
 0x2da   : > { %907 = vmatmul.msk.bf16.vlgmr.msra.gmra.mxu3 %vm359_vm1, %v565_v7 }
 0x33d   : > { %v1330_v11 = vpop.f32.mrf.mxu3 }
 0x345   : > { %v1332_v12 = vpop.f32.mrf.mxu3 }
 0x34c   : > { %v513_v17 = vpop.f32.mrf.mxu0 }
 0x34d   : > { %v442_v13 = vpop.f32.mrf.mxu3  ;;  %v518_v20 = vsel %vm359_vm1, %v513_v17, -inf }
 0x34e   : > { %v447_v14 = vsel %vm359_vm1, %v442_v13, -inf }
 0x34f   : > { %448 = vmax.xlane.f32.xlu1 %v447_v14 }
 0x354   : > { %v515_v21 = vpop.f32.mrf.mxu0 }
 0x355   : > { %v444_v15 = vpop.f32.mrf.mxu3  ;;  %v521_v22 = vsel %vm359_vm1, %v515_v21, -inf }
 0x356   : > { %v450_v16 = vsel %vm359_vm1, %v444_v15, -inf }
 0x357   : > { %451 = vmax.xlane.f32.xlu0 %v450_v16 }
 0x35d   : > { %v583_v18 = vpop.f32.mrf.mxu3 }
 0x35e   : > { %v588_v19 = vsel %vm359_vm1, %v583_v18, -inf }
 0x35f   : > { %589 = vmax.xlane.f32.xlu2 %v588_v19  ;;  %519 = vmax.xlane.f32.xlu0 %v518_v20 }
 0x365   : > { %v585_v44 = vpop.f32.mrf.mxu3 }
 0x366   : > { %v591_v46 = vsel %vm359_vm1, %v585_v44, -inf }
 0x367   : > { %522 = vmax.xlane.f32.xlu0 %v521_v22 }
 0x368   : > { %474 = vrot.lane.b32.xlu1 %v1299_v42, %s1150_s20  ;;  %s1072_s20 = scalar_lea.hbm %s1453_s6, 128 }
 0x3c2   : > { %v449_v24 = vpop.xlane.xlu1 %448 }
 0x3c3   : > { %v453_v39 = vsub.f32 %v442_v13, %v449_v24 }
 0x3c5   : > { %v455_v43 = vmul.f32 1.442695, %v453_v39 }
 0x3ca   : > { %v452_v23 = vpop.xlane.xlu0 %451 }
 0x3cb   : > { %v454_v45 = vsub.f32 %v444_v15, %v452_v23 }
 0x3cd   : > { %v457_v47 = vmul.f32 1.442695, %v454_v45 }
 0x3d2   : > { %v520_v25 = vpop.xlane.xlu0 %519  ;;  %v590_v26 = vpop.xlane.xlu2 %589 }
 0x3d3   : > { %v524_v27 = vsub.f32 %v513_v17, %v520_v25  ;;  %v594_v29 = vsub.f32 %v583_v18, %v590_v26  ;;  %v948_v26 = vld [vmem:[%s1450_s3 + $0x18] sm:$0xff] }
 0x3d4   : > { %710 = vmatpush.bf16.msra.mxu0 %v948_v26 }
 0x3d5   : > { %v526_v28 = vmul.f32 1.442695, %v524_v27  ;;  %v596_v30 = vmul.f32 1.442695, %v594_v29  ;;  %v947_v27 = vld [vmem:[%s1450_s3 + $0x10] sm:$0xff]  ;;  %v945_v29 = vld [vmem:[%s1450_s3] sm:$0xff] }
 0x3d7   : > { %1028 = vpow2.f32 %v526_v28  ;;  %v946_v28 = vld [vmem:[%s1450_s3 + $0x8] sm:$0xff] }
 0x3d8   : > { %1030 = vpow2.f32 %v596_v30  ;;  %711 = vmatpush.bf16.msra.mxu0 %v947_v27 }
 0x3da   : > { %v523_v31 = vpop.xlane.xlu0 %522  ;;  %v475_v32 = vpop.permute.xlu1 %474 }
 0x3db   : > { %v525_v33 = vsub.f32 %v515_v21, %v523_v31  ;;  %487 = vmatpush.bf16.msrb.mxu2 %v475_v32 }
 0x3dc   : > { %712 = vmatpush.bf16.msra.mxu0 %v946_v28 }
 0x3dd   : > { %v528_v34 = vmul.f32 1.442695, %v525_v33  ;;  %v1029_v35 = vpop.eup %1028 }
 0x3de   : > { %v530_v36 = vsel %vm359_vm1, %v1029_v35, 0.0  ;;  %v1031_v37 = vpop.eup %1030 }
 0x3df   : > { %1032 = vpow2.f32 %v528_v34  ;;  %531 = vadd.xlane.f32.xlu2 %v530_v36  ;;  %v600_v41 = vsel %vm359_vm1, %v1031_v37, 0.0 }
 0x3e0   : > { %1034 = vpow2.f32 %v455_v43  ;;  %713 = vmatpush.bf16.msra.mxu0 %v945_v29 }
 0x3e1   : > { %1036 = vpow2.f32 %v457_v47 }
 0x3e5   : > { %v1033_v38 = vpop.eup %1032 }
 0x3e6   : > { %v533_v40 = vsel %vm359_vm1, %v1033_v38, 0.0  ;;  %v1035_v48 = vpop.eup %1034 }
 0x3e7   : > { %534 = vadd.xlane.f32.xlu0 %v533_v40  ;;  %601 = vadd.xlane.f32.xlu2 %v600_v41  ;;  %v459_v49 = vsel %vm359_vm1, %v1035_v48, 0.0  ;;  %v1037_v50 = vpop.eup %1036 }
 0x3e8   : > { %v462_v51 = vsel %vm359_vm1, %v1037_v50, 0.0 }
 0x3ef   : > { %592 = vmax.xlane.f32.xlu0 %v591_v46 }
 0x3f7   : > { %460 = vadd.xlane.f32.xlu0 %v459_v49 }
 0x3ff   : > { %463 = vadd.xlane.f32.xlu0 %v462_v51  ;;  %614 = vrot.lane.b32.xlu2 %v1299_v42, %s1153_s29 }
 0x452   : > { %v532_v52 = vpop.xlane.xlu2 %531 }
 0x453   : > { %1038 = vrcp.f32 %v532_v52 }
 0x459   : > { %v1039_v53 = vpop.eup %1038 }
 0x45a   : > { %v535_v54 = vpop.xlane.xlu0 %534  ;;  %v538_v55 = vmul.f32 %v1039_v53, %v1029_v35  ;;  %v602_v56 = vpop.xlane.xlu2 %601 }
 0x45b   : > { %1040 = vrcp.f32 %v535_v54 }
 0x45c   : > { %1042 = vrcp.f32 %v602_v56  ;;  %904 = vst.msk [vmem:[%s1318_s12 + $0x20] sm:$0xff] %vm359_vm1, %v538_v55 }
 0x461   : > { %v1041_v57 = vpop.eup %1040 }
 0x462   : > { %v1043_v58 = vpop.eup %1042  ;;  %v539_v59 = vmul.f32 %v1041_v57, %v1033_v38  ;;  %v593_v60 = vpop.xlane.xlu0 %592 }
 0x463   : > { %v608_v61 = vmul.f32 %v1043_v58, %v1031_v37  ;;  %v615_v62 = vpop.permute.xlu2 %614  ;;  %v595_v63 = vsub.f32 %v585_v44, %v593_v60 }
 0x464   : > { %905 = vst.msk [vmem:[%s1318_s12 + $0x28] sm:$0xff] %vm359_vm1, %v539_v59  ;;  %627 = vmatpush.bf16.msra.mxu2 %v615_v62  ;;  %v543_v0 = vpack.c.bf16 %v539_v59, %v538_v55 }
 0x465   : > { %908 = vst.msk [vmem:[%s1318_s12 + $0x30] sm:$0xff] %vm359_vm1, %v608_v61  ;;  %v598_v1 = vmul.f32 1.442695, %v595_v63 }
 0x467   : > { %1044 = vpow2.f32 %v598_v1 }
 0x46a   : > { %v461_v2 = vpop.xlane.xlu0 %460 }
 0x46b   : > { %1046 = vrcp.f32 %v461_v2 }
 0x46d   : > { %v1045_v3 = vpop.eup %1044 }
 0x46e   : > { %v603_v4 = vsel %vm359_vm1, %v1045_v3, 0.0 }
 0x46f   : > { %604 = vadd.xlane.f32.xlu0 %v603_v4 }
 0x471   : > { %v1047_v5 = vpop.eup %1046 }
 0x472   : > { %v467_v6 = vmul.f32 %v1047_v5, %v1035_v48  ;;  %v464_v7 = vpop.xlane.xlu0 %463 }
 0x473   : > { %1048 = vrcp.f32 %v464_v7 }
 0x474   : > { %900 = vst.msk [vmem:[%s1318_s12 + $0x10] sm:$0xff] %vm359_vm1, %v467_v6 }
 0x479   : > { %v1049_v8 = vpop.eup %1048 }
 0x47a   : > { %v468_v9 = vmul.f32 %v1049_v8, %v1037_v50 }
 0x47c   : > { %901 = vst.msk [vmem:[%s1318_s12 + $0x18] sm:$0xff] %vm359_vm1, %v468_v9  ;;  %v472_v10 = vpack.c.bf16 %v468_v9, %v467_v6 }
 0x47e   : > { %902 = vmatmul.msk.bf16.vlgmr.msrb.gmra.mxu2 %vm359_vm1, %v472_v10 }
 0x483   : > { %544 = vrot.lane.b32.xlu0 %v1299_v42, %s1154_s9 }
 0x4e2   : > { %v605_v13 = vpop.xlane.xlu0 %604 }
 0x4e3   : > { %1050 = vrcp.f32 %v605_v13 }
 0x4e9   : > { %v1051_v14 = vpop.eup %1050 }
 0x4ea   : > { %v609_v15 = vmul.f32 %v1051_v14, %v1045_v3 }
 0x4ec   : > { %909 = vst.msk [vmem:[%s1318_s12 + $0x38] sm:$0xff] %vm359_vm1, %v609_v15  ;;  %v613_v16 = vpack.c.bf16 %v609_v15, %v608_v61 }
 0x4ee   : > { %910 = vmatmul.msk.bf16.vlgmr.msra.gmra.mxu2 %vm359_vm1, %v613_v16 }
 0x4f5   : > { %v545_v17 = vpop.permute.xlu0 %544 }
 0x4f6   : > { %557 = vmatpush.bf16.msrb.mxu1 %v545_v17 }
 0x4f9   : > { %906 = vmatmul.msk.bf16.vlgmr.msrb.gmra.mxu1 %vm359_vm1, %v543_v0 }
 0x501   : > { %v489_v18 = vpop.f32.mrf.mxu2 }
 0x509   : > { %v491_v20 = vpop.f32.mrf.mxu2 }
 0x50a   : > { %v1009_v23 = vpack.i.bf16 %v491_v20, %v489_v18 }
 0x571   : > { %v629_v42 = vpop.f32.mrf.mxu2 }
 0x576   : > { %v559_v19 = vpop.f32.mrf.mxu1 }
 0x579   : > { %v631_v24 = vpop.f32.mrf.mxu2 }
 0x57a   : > { %v1014_v25 = vpack.i.bf16 %v631_v24, %v629_v42 }
 0x57e   : > { %v561_v21 = vpop.f32.mrf.mxu1 }
 0x57f   : > { %v1004_v22 = vpack.i.bf16 %v561_v21, %v559_v19 }
 0x581   : > { %1005 = vrot.lane.b32.xlu1 %v1004_v22, %s1152_s28 }
 0x589   : > { %1010 = vrot.lane.b32.xlu1 %v1009_v23, %s1151_s26 }
 0x591   : > { %1015 = vrot.lane.b32.xlu1 %v1014_v25, %s1148_s18  ;;  %s950_s18 = sshll.u32 %s1213_s25, 6 }
 0x592   : > { %s756_s9 = scalar_lea.hbm %s1453_s6, %s950_s18 }
 0x593   : > { %s759_s13 = sshll.u32 %s756_s9, 4  ;;  %s760_s13 = int_to_ptr.hbm [resolvable:$true] %s759_s13 }
 0x594   : > { %s1066_s16 = sshra.s32 %s760_s13, 4  ;;  %s1067_s16 = int_to_ptr.hbm [resolvable:$true] %s1066_s16 }
 0x595   : > { %s1068_s15 = scalar_lea.hbm %s1067_s16, 64  ;;  %p1073_p0 = scmp.lt.s32.totalorder %s1067_s16, %s1453_s6 }
 0x596   : > { %p1069_p11 = scmp.ne.s32.totalorder %s1067_s16, %s1068_s15  ;;  %p1074_p1 = scmp.lt.s32.totalorder %s1072_s20, %s1068_s15 }
 0x598   : > { %p1070_p12 = pnand %p1069_p11, %p1230_p5  ;;  %p1075_p2 = por %p1074_p1, %p1073_p0 }
 0x59a   : > { %p1071_p13 = pneg %p1070_p12 }
 0x59c   : > { %p1076_p3 = pnand %p1075_p2, %p1071_p13 }
 0x5f3   : > { %v1006_v30 = vpop.permute.xlu1 %1005 }
 0x5f4   : > { %v1008_v36 = vunpack.i.h.bf16 %v1006_v30  ;;  %v1007_v37 = vunpack.i.l.bf16 %v1006_v30 }
 0x5fb   : > { %v1011_v31 = vpop.permute.xlu1 %1010 }
 0x5fc   : > { %v1013_v32 = vunpack.i.h.bf16 %v1011_v31  ;;  %v1012_v33 = vunpack.i.l.bf16 %v1011_v31 }
 0x5fe   : > { %v659_v34 = vsel %vm359_vm1, %v1332_v12, %v1013_v32  ;;  %v658_v35 = vsel %vm359_vm1, %v1330_v11, %v1012_v33 }
 0x5ff   : > { %v661_v41 = vsel %vm660_vm2, %v658_v35, %v1007_v37  ;;  %v662_v43 = vsel %vm660_vm2, %v659_v34, %v1008_v36 }
 0x603   : > { %v1016_v38 = vpop.permute.xlu1 %1015 }
 0x604   : > { %v1018_v39 = vunpack.i.h.bf16 %v1016_v38  ;;  %v1017_v40 = vunpack.i.l.bf16 %v1016_v38 }
 0x606   : > { %v664_v44 = vsel %vm663_vm3, %v661_v41, %v1017_v40  ;;  %v665_v45 = vsel %vm663_vm3, %v662_v43, %v1018_v39 }
 0x607   : > { %v666_v46 = vpack.c.bf16 %v665_v45, %v664_v44 }
 0x609   : > { %927 = vmatmul.msk.bf16.vlgmr.msra.gmra.mxu0 %vm319_vm0, %v666_v46 }
 0x60a   : > { %1079 = shalt.err (!%p1076_p3)
}
 0x60b   : > { %s1155_s12 = smov 128   ;;  %s1156_s18 = smov 8   ;;  %v1019_v11 = vld [vmem:[%s1451_s4] ss:$0 sm:$0xff] }
 0x60c   : > { %952 = dma.vmem_to_hbm [thread:$0]  (%p1230_p5), %s758_s11, 1024, %s760_s13, %s728_s14, %s1155_s12, %s1155_s12, %s1156_s18  }
 0x60d   : > { %s859_s28 = sshll.u32 %s1315_s10, 4  ;;  %s949_s0 = sshll.u32 %s1213_s25, 4 }
 0x60e   : > { %s248_s16 = scalar_lea.vmem [#allocation2], %s859_s28  ;;  %s739_s19 = scalar_lea.hbm %s1452_s5, %s949_s0 }
 0x60f   : > { %s740_s20 = sshll.u32 %s248_s16, 4  ;;  %s742_s26 = sshll.u32 %s739_s19, 4  ;;  %s741_s20 = int_to_ptr.vmem [resolvable:$true] %s740_s20  ;;  %s743_s26 = int_to_ptr.hbm [resolvable:$true] %s742_s26 }
 0x610   : > { %s723_s11 = scalar_lea.sflag [#allocation3], %s1315_s10  ;;  %s1094_s13 = sshra.s32 %s743_s26, 4  ;;  %s1095_s13 = int_to_ptr.hbm [resolvable:$true] %s1094_s13 }
 0x611   : > { %s1096_s25 = scalar_lea.hbm %s1095_s13, 16  ;;  %s1100_s29 = scalar_lea.hbm %s1452_s5, 32 }
 0x612   : > { %p1097_p4 = scmp.ne.s32.totalorder %s1095_s13, %s1096_s25  ;;  %p1101_p9 = scmp.lt.s32.totalorder %s1095_s13, %s1452_s5 }
 0x613   : > { %p1102_p10 = scmp.lt.s32.totalorder %s1100_s29, %s1096_s25 }
 0x614   : > { %p1098_p7 = pnand %p1097_p4, %p1230_p5 }
 0x615   : > { %p1103_p11 = por %p1102_p10, %p1101_p9 }
 0x616   : > { %p1099_p8 = pneg %p1098_p7 }
 0x618   : > { %p1104_p12 = pnand %p1103_p11, %p1099_p8 }
 0x686   : > { %v715_v12 = vpop.f32.mrf.mxu0 }
 0x687   : > { %v716_v47 = vadd.f32 %v1019_v11, %v715_v12 }
 0x689   : > { %720 = vst.msk [vmem:[%s248_s16] sm:$0xff] %vm319_vm0, %v716_v47 }
 0x68e   : > { %v717_v48 = vpop.f32.mrf.mxu0 }
 0x68f   : > { %v718_v49 = vadd.f32 %v1019_v11, %v717_v48 }
 0x691   : > { %721 = vst.msk [vmem:[%s248_s16 + $0x8] sm:$0xff] %vm319_vm0, %v718_v49 }
 0x692   : > { %1107 = shalt.err (!%p1104_p12)
}
 0x693   : > { %951 = dma.vmem_to_hbm [thread:$0]  (%p1230_p5), %s741_s20, 256, %s743_s26, %s723_s11, %s1155_s12, %s1155_s12, %s1156_s18  }
 0x694 PF: > { %p962_p13 = scmp.ge.s32.totalorder %s1146_s24, 2  ;;  %s774_s10 = sand.u32 1, %s1134_s21  }
 0x695   : > { %s775_s16 = scalar_lea.sflag [#allocation3], %s774_s10 }
 0x696   : > { %p956_p0 = pnand %p962_p13, %p1234_p6 }
 0x698   : > { %p957_p1 = pneg %p956_p0 }
 0x69a   : > { %1125 = dma.done.wait (%p957_p1), %s775_s16, 256  }
 0x69b   : > { %1127 = vsyncadd (%p957_p1), %s775_s16, 4294967040  ;;  %s785_s15 = scalar_lea.sflag [#allocation5], %s774_s10 }
 0x69c   : > { %1129 = dma.done.wait (%p957_p1), %s785_s15, 1024  }
 0x69d   : > { %1131 = vsyncadd (%p957_p1), %s785_s15, 4294966272  ;;  %p20_p5 = scmp.ge.s32.totalorder %s1217_s27, 4   ;;  %s1458_s21 = smov %s1138_s22 }
 0x69e   : > { %s1459_s22 = smov %s1142_s23  ;;  %s1460_s23 = smov %s1228_s30 }
 0x69f   : > { %s1461_s24 = smov %s1217_s27  ;;  %22 = sbr.rel (!%p20_p5) target bundleno = 7 (0x7), region = 95 }
 0x6a4   :  { %791 = vsyncpa [#allocation3], 1 }
 0x6a5   :  { %793 = vsyncpa [#allocation3 + $0x1], 1 }
 0x6a6   :  { %794 = vsyncpa [#allocation5], 1 }
 0x6a7   :  { %796 = vsyncpa [#allocation5 + $0x1], 1 }

</bundles_post_ra>
